<compile_context>
chip_gen: v6e
topology: v6e:2x2x1
jax: 0.10.0
libtpu: 0.0.40
codegen_flags: <defaults>
</compile_context>

<pallas_src>
import functools

import jax
import jax.numpy as jnp
from jax.experimental import pallas as pl
from jax.experimental.pallas import tpu as pltpu


def _round_up(n, m):
    return (n + m - 1) // m * m


# ---------------------------------------------------------------------------
# Kernel: fused 4-layer MLP on one batch tile.  MXU operands are in the
# weights' dtype (bf16 default / f32 verification); accumulation is f32.
# ---------------------------------------------------------------------------
def ff_kernel(x_ref, w1_ref, b1_ref, w2_ref, b2_ref, w3_ref, b3_ref,
              w4_ref, b4_ref, o_ref):
    cdt = w1_ref.dtype

    # Layer 1: Linear(Din, hidden) + ReLU
    h = jnp.dot(x_ref[...].astype(cdt), w1_ref[...],
                preferred_element_type=jnp.float32) + b1_ref[...]
    h = jnp.maximum(h, 0.0)
    # Layer 2: Linear(hidden, hidden) + ReLU
    h = jnp.dot(h.astype(cdt), w2_ref[...],
                preferred_element_type=jnp.float32) + b2_ref[...]
    h = jnp.maximum(h, 0.0)
    # Layer 3: Linear(hidden, hidden) + ReLU
    h = jnp.dot(h.astype(cdt), w3_ref[...],
                preferred_element_type=jnp.float32) + b3_ref[...]
    h = jnp.maximum(h, 0.0)
    # Layer 4: Linear(hidden, Dout)  (no activation)
    o_ref[...] = (jnp.dot(h.astype(cdt), w4_ref[...],
                          preferred_element_type=jnp.float32)
                  + b4_ref[...]).astype(o_ref.dtype)


def pad_ff_params(params, compute_dtype=jnp.bfloat16):
    """Zero-pad every feature dim to a multiple of 128 (lane-dense) and cast
    weights to the MXU compute dtype (bf16 default, f32 for exact checks).
    Biases stay f32 so they add into the f32 accumulator."""
    padded = {}
    for i in range(1, 5):
        w = params[f"w{i}"]
        b = params[f"b{i}"]
        kin, kout = w.shape
        kin_p, kout_p = _round_up(kin, 128), _round_up(kout, 128)
        w_p = jnp.zeros((kin_p, kout_p), compute_dtype)
        w_p = w_p.at[:kin, :kout].set(w.astype(compute_dtype))
        b_p = jnp.zeros((1, kout_p), jnp.float32).at[:, :kout].set(b)
        padded[f"w{i}"] = w_p
        padded[f"b{i}"] = b_p
    return padded


def _vmem_limit_bytes():
    """Per-generation VMEM limit: leave headroom below physical capacity on
    v7x (64 MiB), use most of v5e/v6e's 128 MiB.  Falls back to a value that
    is safe on every generation."""
    try:
        info = pltpu.get_tpu_info()
        cap = None
        for name in ("vmem_capacity_bytes", "vmem_size_bytes", "vmem_bytes"):
            cap = getattr(info, name, None)
            if cap:
                break
        if cap:
            return int(min(int(cap) - 12 * 1024 * 1024, 100 * 1024 * 1024))
    except Exception:
        pass
    return 48 * 1024 * 1024


def _pick_batch_tile(B, din_p, hid_p, dout_p, cdt_itemsize, weight_bytes,
                     vmem_limit, mult):
    # Target 256 rows: fills the 256-wide MXU on v6e/v7x; still fine on v5e
    # (128-wide MXU, where the benefit is just grid-step/DMA amortization).
    target = 256
    # Keep >= 2 grid steps for moderately sized batches so v7x's two
    # TensorCores both get work under dimension_semantics=("parallel",).
    if B > mult:
        target = min(target, _round_up(-(-B // 2), mult))
    target = min(target, _round_up(max(B, 1), mult))
    # VMEM clamp: x tile (2 pipeline buffers, compute dtype), out tile
    # (2 buffers, f32) and ~3 live f32 intermediates of the widest feature dim.
    max_feat = max(din_p, hid_p, dout_p)
    budget = vmem_limit - weight_bytes - 4 * 1024 * 1024
    per_row = 2 * din_p * cdt_itemsize + 2 * dout_p * 4 + 3 * max_feat * 4
    cap = max(mult, (budget // max(per_row, 1)) // mult * mult)
    return int(max(mult, min(target, cap)))


@functools.partial(
    jax.jit, static_argnames=("dout", "batch_tile", "single_buffer_weights"))
def ff_forward(x, padded_params, *, dout, batch_tile=None,
               single_buffer_weights=True):
    """x: [B, Din].  padded_params: output of pad_ff_params.
    dout: original (unpadded) output feature count."""
    B, Din = x.shape
    w1 = padded_params["w1"]
    cdt = w1.dtype
    din_p = w1.shape[0]
    hid_p = padded_params["w2"].shape[0]
    dout_p = padded_params["w4"].shape[1]

    weight_bytes = sum(int(v.size) * v.dtype.itemsize
                       for v in padded_params.values())
    resident_weight_bytes = weight_bytes * (1 if single_buffer_weights else 2)
    vmem_limit = _vmem_limit_bytes()

    mult = 16 if cdt == jnp.bfloat16 else 8
    if batch_tile is None:
        batch_tile = _pick_batch_tile(B, din_p, hid_p, dout_p,
                                      jnp.dtype(cdt).itemsize,
                                      resident_weight_bytes, vmem_limit, mult)
    b_p = _round_up(max(B, 1), batch_tile)

    # Single fused cast+pad (or nothing when already aligned) -- no zeros+scatter.
    x_c = x.astype(cdt) if x.dtype != cdt else x
    if b_p != B or din_p != Din:
        x_p = jnp.pad(x_c, ((0, b_p - B), (0, din_p - Din)))
    else:
        x_p = x_c

    grid = (b_p // batch_tile,)

    def full_spec(arr):
        # Grid-invariant (constant index_map): DMA'd once for the whole grid.
        if single_buffer_weights:
            # Second pipeline buffer is dead weight -> single-buffer it.
            return pl.BlockSpec(arr.shape, lambda i: (0, 0),
                                pipeline_mode=pl.Buffered(1))
        return pl.BlockSpec(arr.shape, lambda i: (0, 0))

    flops = 2 * b_p * (din_p * hid_p + 2 * hid_p * hid_p + hid_p * dout_p)
    bytes_accessed = (int(x_p.size) * x_p.dtype.itemsize
                      + weight_bytes
                      + b_p * dout_p * 4)
    cost = pl.CostEstimate(flops=int(flops), transcendentals=0,
                           bytes_accessed=int(bytes_accessed))

    out_p = pl.pallas_call(
        ff_kernel,
        out_shape=jax.ShapeDtypeStruct((b_p, dout_p), jnp.float32),
        grid_spec=pltpu.PrefetchScalarGridSpec(
            num_scalar_prefetch=0,
            grid=grid,
            in_specs=[
                pl.BlockSpec((batch_tile, din_p), lambda i: (i, 0)),     # x
                full_spec(padded_params["w1"]), full_spec(padded_params["b1"]),
                full_spec(padded_params["w2"]), full_spec(padded_params["b2"]),
                full_spec(padded_params["w3"]), full_spec(padded_params["b3"]),
                full_spec(padded_params["w4"]), full_spec(padded_params["b4"]),
            ],
            out_specs=pl.BlockSpec((batch_tile, dout_p), lambda i: (i, 0)),
        ),
        compiler_params=pltpu.CompilerParams(
            dimension_semantics=("parallel",),   # v7x: shard batch over 2 TCs
            vmem_limit_bytes=vmem_limit,
        ),
        cost_estimate=cost,
    )(x_p,
      padded_params["w1"], padded_params["b1"],
      padded_params["w2"], padded_params["b2"],
      padded_params["w3"], padded_params["b3"],
      padded_params["w4"], padded_params["b4"])

    if b_p == B and dout_p == dout:
        return out_p
    return out_p[:B, :dout]


def init_ff_params(key, Dout, Din, hidden):
    """Deterministic init mimicking nn.Linear's U(-1/sqrt(fan_in), 1/sqrt(fan_in)).
    Weights are stored [in, out] (transposed vs PyTorch)."""
    dims = [(Din, hidden), (hidden, hidden), (hidden, hidden), (hidden, Dout)]
    params = {}
    for idx, (fan_in, fan_out) in enumerate(dims, start=1):
        key, kw, kb = jax.random.split(key, 3)
        bound = 1.0 / jnp.sqrt(fan_in)
        params[f"w{idx}"] = jax.random.uniform(
            kw, (fan_in, fan_out), jnp.float32, -bound, bound)
        params[f"b{idx}"] = jax.random.uniform(
            kb, (1, fan_out), jnp.float32, -bound, bound)
    return params


def ff_reference(x, params):
    """Pure-JAX reference for correctness checking."""
    h = jnp.maximum(x @ params["w1"] + params["b1"], 0.0)
    h = jnp.maximum(h @ params["w2"] + params["b2"], 0.0)
    h = jnp.maximum(h @ params["w3"] + params["b3"], 0.0)
    return h @ params["w4"] + params["b4"]


if __name__ == "__main__":
    key = jax.random.PRNGKey(0)
    Din, hidden, Dout = 16, 32, 8
    B = 8  # arbitrary batch (no divisibility requirement)

    k_param, k_x = jax.random.split(key)
    params = init_ff_params(k_param, Dout, Din, hidden)
    x = jax.random.normal(k_x, (B, Din), jnp.float32)

    ref = ff_reference(x, params)

    def run(padded):
        try:
            return jax.block_until_ready(ff_forward(x, padded, dout=Dout))
        except Exception:
            # Fallback if this JAX build rejects single-buffered (Buffered(1))
            # grid-invariant weight blocks.
            return jax.block_until_ready(
                ff_forward(x, padded, dout=Dout, single_buffer_weights=False))

    # f32 MXU operands: exact vs the f32 reference.
    params_f32 = pad_ff_params(params, jnp.float32)
    out_f32 = run(params_f32)
    assert out_f32.shape == (B, Dout)
    assert jnp.allclose(out_f32, ref, atol=1e-5, rtol=1e-5), "f32 mismatch"

    # Default bf16 MXU operands (f32 accumulation): fast path, loose tolerance.
    params_bf16 = pad_ff_params(params)  # bf16 default
    out_bf16 = run(params_bf16)
    assert out_bf16.shape == (B, Dout)
    assert float(jnp.max(jnp.abs(out_bf16 - ref))) < 0.25, "bf16 path diverged"

    print("KERNEL_OK")
</pallas_src>

<mosaic_0001>
module attributes {stable_mosaic.version = 11 : i64} {
  func.func @ff_kernel(%arg0: i32, %arg1: memref<8x128xf32, #tpu.memory_space<vmem>>, %arg2: memref<128x128xf32, #tpu.memory_space<vmem>>, %arg3: memref<1x128xf32, #tpu.memory_space<vmem>>, %arg4: memref<128x128xf32, #tpu.memory_space<vmem>>, %arg5: memref<1x128xf32, #tpu.memory_space<vmem>>, %arg6: memref<128x128xf32, #tpu.memory_space<vmem>>, %arg7: memref<1x128xf32, #tpu.memory_space<vmem>>, %arg8: memref<128x128xf32, #tpu.memory_space<vmem>>, %arg9: memref<1x128xf32, #tpu.memory_space<vmem>>, %arg10: memref<8x128xf32, #tpu.memory_space<vmem>>) attributes {dimension_semantics = [#tpu.dimension_semantics<parallel>], iteration_bounds = array<i64: 1>, scalar_prefetch = 0 : i64, scratch_operands = 0 : i64, tpu.core_type = #tpu.core_type<tc>, window_params = [{transform_indices = @transform_0, window_bounds = array<i64: 8, 128>}, {pipeline_mode = #tpu.pipeline_mode<synchronous>, transform_indices = @transform_1, window_bounds = array<i64: 128, 128>}, {pipeline_mode = #tpu.pipeline_mode<synchronous>, transform_indices = @transform_2, window_bounds = array<i64: 1, 128>}, {pipeline_mode = #tpu.pipeline_mode<synchronous>, transform_indices = @transform_3, window_bounds = array<i64: 128, 128>}, {pipeline_mode = #tpu.pipeline_mode<synchronous>, transform_indices = @transform_4, window_bounds = array<i64: 1, 128>}, {pipeline_mode = #tpu.pipeline_mode<synchronous>, transform_indices = @transform_5, window_bounds = array<i64: 128, 128>}, {pipeline_mode = #tpu.pipeline_mode<synchronous>, transform_indices = @transform_6, window_bounds = array<i64: 1, 128>}, {pipeline_mode = #tpu.pipeline_mode<synchronous>, transform_indices = @transform_7, window_bounds = array<i64: 128, 128>}, {pipeline_mode = #tpu.pipeline_mode<synchronous>, transform_indices = @transform_8, window_bounds = array<i64: 1, 128>}, {transform_indices = @transform_9, window_bounds = array<i64: 8, 128>}]} {
    %c0 = arith.constant 0 : index
    %c0_0 = arith.constant 0 : index
    %0 = vector.load %arg1[%c0, %c0_0] : memref<8x128xf32, #tpu.memory_space<vmem>>, vector<8x128xf32>
    %c0_1 = arith.constant 0 : index
    %c0_2 = arith.constant 0 : index
    %1 = vector.load %arg2[%c0_1, %c0_2] : memref<128x128xf32, #tpu.memory_space<vmem>>, vector<128x128xf32>
    %cst = arith.constant dense<0.000000e+00> : vector<8x128xf32>
    %2 = tpu.matmul %0, %1, %cst {dimension_numbers = #tpu.dot_dimension_numbers<[1], [0], [0], [1], [0, 0, 1, 1], [], []>} : vector<8x128xf32>, vector<128x128xf32>, vector<8x128xf32> -> vector<8x128xf32>
    %c0_3 = arith.constant 0 : index
    %c0_4 = arith.constant 0 : index
    %3 = vector.load %arg3[%c0_3, %c0_4] : memref<1x128xf32, #tpu.memory_space<vmem>>, vector<1x128xf32>
    %4 = vector.broadcast %3 : vector<1x128xf32> to vector<8x128xf32>
    %5 = arith.addf %2, %4 : vector<8x128xf32>
    %cst_5 = arith.constant 0.000000e+00 : f32
    %6 = vector.broadcast %cst_5 : f32 to vector<8x128xf32>
    %7 = arith.maximumf %5, %6 : vector<8x128xf32>
    %c0_6 = arith.constant 0 : index
    %c0_7 = arith.constant 0 : index
    %8 = vector.load %arg4[%c0_6, %c0_7] : memref<128x128xf32, #tpu.memory_space<vmem>>, vector<128x128xf32>
    %cst_8 = arith.constant dense<0.000000e+00> : vector<8x128xf32>
    %9 = tpu.matmul %7, %8, %cst_8 {dimension_numbers = #tpu.dot_dimension_numbers<[1], [0], [0], [1], [0, 0, 1, 1], [], []>} : vector<8x128xf32>, vector<128x128xf32>, vector<8x128xf32> -> vector<8x128xf32>
    %c0_9 = arith.constant 0 : index
    %c0_10 = arith.constant 0 : index
    %10 = vector.load %arg5[%c0_9, %c0_10] : memref<1x128xf32, #tpu.memory_space<vmem>>, vector<1x128xf32>
    %11 = vector.broadcast %10 : vector<1x128xf32> to vector<8x128xf32>
    %12 = arith.addf %9, %11 : vector<8x128xf32>
    %cst_11 = arith.constant 0.000000e+00 : f32
    %13 = vector.broadcast %cst_11 : f32 to vector<8x128xf32>
    %14 = arith.maximumf %12, %13 : vector<8x128xf32>
    %c0_12 = arith.constant 0 : index
    %c0_13 = arith.constant 0 : index
    %15 = vector.load %arg6[%c0_12, %c0_13] : memref<128x128xf32, #tpu.memory_space<vmem>>, vector<128x128xf32>
    %cst_14 = arith.constant dense<0.000000e+00> : vector<8x128xf32>
    %16 = tpu.matmul %14, %15, %cst_14 {dimension_numbers = #tpu.dot_dimension_numbers<[1], [0], [0], [1], [0, 0, 1, 1], [], []>} : vector<8x128xf32>, vector<128x128xf32>, vector<8x128xf32> -> vector<8x128xf32>
    %c0_15 = arith.constant 0 : index
    %c0_16 = arith.constant 0 : index
    %17 = vector.load %arg7[%c0_15, %c0_16] : memref<1x128xf32, #tpu.memory_space<vmem>>, vector<1x128xf32>
    %18 = vector.broadcast %17 : vector<1x128xf32> to vector<8x128xf32>
    %19 = arith.addf %16, %18 : vector<8x128xf32>
    %cst_17 = arith.constant 0.000000e+00 : f32
    %20 = vector.broadcast %cst_17 : f32 to vector<8x128xf32>
    %21 = arith.maximumf %19, %20 : vector<8x128xf32>
    %c0_18 = arith.constant 0 : index
    %c0_19 = arith.constant 0 : index
    %22 = vector.load %arg8[%c0_18, %c0_19] : memref<128x128xf32, #tpu.memory_space<vmem>>, vector<128x128xf32>
    %cst_20 = arith.constant dense<0.000000e+00> : vector<8x128xf32>
    %23 = tpu.matmul %21, %22, %cst_20 {dimension_numbers = #tpu.dot_dimension_numbers<[1], [0], [0], [1], [0, 0, 1, 1], [], []>} : vector<8x128xf32>, vector<128x128xf32>, vector<8x128xf32> -> vector<8x128xf32>
    %c0_21 = arith.constant 0 : index
    %c0_22 = arith.constant 0 : index
    %24 = vector.load %arg9[%c0_21, %c0_22] : memref<1x128xf32, #tpu.memory_space<vmem>>, vector<1x128xf32>
    %25 = vector.broadcast %24 : vector<1x128xf32> to vector<8x128xf32>
    %26 = arith.addf %23, %25 : vector<8x128xf32>
    %c0_23 = arith.constant 0 : index
    %c0_24 = arith.constant 0 : index
    %27 = vector.load %arg10[%c0_23, %c0_24] : memref<8x128xf32, #tpu.memory_space<vmem>>, vector<8x128xf32>
    tpu.vector_store %arg10[%c0_23, %c0_24], %26 {strides = array<i32>} : memref<8x128xf32, #tpu.memory_space<vmem>>, vector<8x128xf32>,
    return
  }
  func.func @transform_0(%arg0: i32) -> (i32, i32) {
    %c0_i32 = arith.constant 0 : i32
    %c0_i32_0 = arith.constant 0 : i32
    return %arg0, %c0_i32 : i32, i32
  }
  func.func @transform_1(%arg0: i32) -> (i32, i32) {
    %c0_i32 = arith.constant 0 : i32
    %c0_i32_0 = arith.constant 0 : i32
    %c0_i32_1 = arith.constant 0 : i32
    return %c0_i32, %c0_i32_0 : i32, i32
  }
  func.func @transform_2(%arg0: i32) -> (i32, i32) {
    %c0_i32 = arith.constant 0 : i32
    %c0_i32_0 = arith.constant 0 : i32
    %c0_i32_1 = arith.constant 0 : i32
    return %c0_i32, %c0_i32_0 : i32, i32
  }
  func.func @transform_3(%arg0: i32) -> (i32, i32) {
    %c0_i32 = arith.constant 0 : i32
    %c0_i32_0 = arith.constant 0 : i32
    %c0_i32_1 = arith.constant 0 : i32
    return %c0_i32, %c0_i32_0 : i32, i32
  }
  func.func @transform_4(%arg0: i32) -> (i32, i32) {
    %c0_i32 = arith.constant 0 : i32
    %c0_i32_0 = arith.constant 0 : i32
    %c0_i32_1 = arith.constant 0 : i32
    return %c0_i32, %c0_i32_0 : i32, i32
  }
  func.func @transform_5(%arg0: i32) -> (i32, i32) {
    %c0_i32 = arith.constant 0 : i32
    %c0_i32_0 = arith.constant 0 : i32
    %c0_i32_1 = arith.constant 0 : i32
    return %c0_i32, %c0_i32_0 : i32, i32
  }
  func.func @transform_6(%arg0: i32) -> (i32, i32) {
    %c0_i32 = arith.constant 0 : i32
    %c0_i32_0 = arith.constant 0 : i32
    %c0_i32_1 = arith.constant 0 : i32
    return %c0_i32, %c0_i32_0 : i32, i32
  }
  func.func @transform_7(%arg0: i32) -> (i32, i32) {
    %c0_i32 = arith.constant 0 : i32
    %c0_i32_0 = arith.constant 0 : i32
    %c0_i32_1 = arith.constant 0 : i32
    return %c0_i32, %c0_i32_0 : i32, i32
  }
  func.func @transform_8(%arg0: i32) -> (i32, i32) {
    %c0_i32 = arith.constant 0 : i32
    %c0_i32_0 = arith.constant 0 : i32
    %c0_i32_1 = arith.constant 0 : i32
    return %c0_i32, %c0_i32_0 : i32, i32
  }
  func.func @transform_9(%arg0: i32) -> (i32, i32) {
    %c0_i32 = arith.constant 0 : i32
    %c0_i32_0 = arith.constant 0 : i32
    return %arg0, %c0_i32 : i32, i32
  }
}

module attributes {stable_mosaic.version = 11 : i64} {
  func.func @ff_kernel(%arg0: i32, %arg1: memref<8x128xf32, #tpu.memory_space<vmem>>, %arg2: memref<128x128xf32, #tpu.memory_space<vmem>>, %arg3: memref<1x128xf32, #tpu.memory_space<vmem>>, %arg4: memref<128x128xf32, #tpu.memory_space<vmem>>, %arg5: memref<1x128xf32, #tpu.memory_space<vmem>>, %arg6: memref<128x128xf32, #tpu.memory_space<vmem>>, %arg7: memref<1x128xf32, #tpu.memory_space<vmem>>, %arg8: memref<128x128xf32, #tpu.memory_space<vmem>>, %arg9: memref<1x128xf32, #tpu.memory_space<vmem>>, %arg10: memref<8x128xf32, #tpu.memory_space<vmem>>) attributes {dimension_semantics = [#tpu.dimension_semantics<parallel>], iteration_bounds = array<i64: 1>, scalar_prefetch = 0 : i64, scratch_operands = 0 : i64, tpu.core_type = #tpu.core_type<tc>, window_params = [{transform_indices = @transform_0, window_bounds = array<i64: 8, 128>}, {pipeline_mode = #tpu.pipeline_mode<synchronous>, transform_indices = @transform_1, window_bounds = array<i64: 128, 128>}, {pipeline_mode = #tpu.pipeline_mode<synchronous>, transform_indices = @transform_2, window_bounds = array<i64: 1, 128>}, {pipeline_mode = #tpu.pipeline_mode<synchronous>, transform_indices = @transform_3, window_bounds = array<i64: 128, 128>}, {pipeline_mode = #tpu.pipeline_mode<synchronous>, transform_indices = @transform_4, window_bounds = array<i64: 1, 128>}, {pipeline_mode = #tpu.pipeline_mode<synchronous>, transform_indices = @transform_5, window_bounds = array<i64: 128, 128>}, {pipeline_mode = #tpu.pipeline_mode<synchronous>, transform_indices = @transform_6, window_bounds = array<i64: 1, 128>}, {pipeline_mode = #tpu.pipeline_mode<synchronous>, transform_indices = @transform_7, window_bounds = array<i64: 128, 128>}, {pipeline_mode = #tpu.pipeline_mode<synchronous>, transform_indices = @transform_8, window_bounds = array<i64: 1, 128>}, {transform_indices = @transform_9, window_bounds = array<i64: 8, 128>}]} {
    %c0 = arith.constant 0 : index
    %c0_0 = arith.constant 0 : index
    %0 = vector.load %arg1[%c0, %c0_0] : memref<8x128xf32, #tpu.memory_space<vmem>>, vector<8x128xf32>
    %c0_1 = arith.constant 0 : index
    %c0_2 = arith.constant 0 : index
    %1 = vector.load %arg2[%c0_1, %c0_2] : memref<128x128xf32, #tpu.memory_space<vmem>>, vector<128x128xf32>
    %cst = arith.constant dense<0.000000e+00> : vector<8x128xf32>
    %2 = tpu.matmul %0, %1, %cst {dimension_numbers = #tpu.dot_dimension_numbers<[1], [0], [0], [1], [0, 0, 1, 1], [], []>} : vector<8x128xf32>, vector<128x128xf32>, vector<8x128xf32> -> vector<8x128xf32>
    %c0_3 = arith.constant 0 : index
    %c0_4 = arith.constant 0 : index
    %3 = vector.load %arg3[%c0_3, %c0_4] : memref<1x128xf32, #tpu.memory_space<vmem>>, vector<1x128xf32>
    %4 = vector.broadcast %3 : vector<1x128xf32> to vector<8x128xf32>
    %5 = arith.addf %2, %4 : vector<8x128xf32>
    %cst_5 = arith.constant 0.000000e+00 : f32
    %6 = vector.broadcast %cst_5 : f32 to vector<8x128xf32>
    %7 = arith.maximumf %5, %6 : vector<8x128xf32>
    %c0_6 = arith.constant 0 : index
    %c0_7 = arith.constant 0 : index
    %8 = vector.load %arg4[%c0_6, %c0_7] : memref<128x128xf32, #tpu.memory_space<vmem>>, vector<128x128xf32>
    %cst_8 = arith.constant dense<0.000000e+00> : vector<8x128xf32>
    %9 = tpu.matmul %7, %8, %cst_8 {dimension_numbers = #tpu.dot_dimension_numbers<[1], [0], [0], [1], [0, 0, 1, 1], [], []>} : vector<8x128xf32>, vector<128x128xf32>, vector<8x128xf32> -> vector<8x128xf32>
    %c0_9 = arith.constant 0 : index
    %c0_10 = arith.constant 0 : index
    %10 = vector.load %arg5[%c0_9, %c0_10] : memref<1x128xf32, #tpu.memory_space<vmem>>, vector<1x128xf32>
    %11 = vector.broadcast %10 : vector<1x128xf32> to vector<8x128xf32>
    %12 = arith.addf %9, %11 : vector<8x128xf32>
    %cst_11 = arith.constant 0.000000e+00 : f32
    %13 = vector.broadcast %cst_11 : f32 to vector<8x128xf32>
    %14 = arith.maximumf %12, %13 : vector<8x128xf32>
    %c0_12 = arith.constant 0 : index
    %c0_13 = arith.constant 0 : index
    %15 = vector.load %arg6[%c0_12, %c0_13] : memref<128x128xf32, #tpu.memory_space<vmem>>, vector<128x128xf32>
    %cst_14 = arith.constant dense<0.000000e+00> : vector<8x128xf32>
    %16 = tpu.matmul %14, %15, %cst_14 {dimension_numbers = #tpu.dot_dimension_numbers<[1], [0], [0], [1], [0, 0, 1, 1], [], []>} : vector<8x128xf32>, vector<128x128xf32>, vector<8x128xf32> -> vector<8x128xf32>
    %c0_15 = arith.constant 0 : index
    %c0_16 = arith.constant 0 : index
    %17 = vector.load %arg7[%c0_15, %c0_16] : memref<1x128xf32, #tpu.memory_space<vmem>>, vector<1x128xf32>
    %18 = vector.broadcast %17 : vector<1x128xf32> to vector<8x128xf32>
    %19 = arith.addf %16, %18 : vector<8x128xf32>
    %cst_17 = arith.constant 0.000000e+00 : f32
    %20 = vector.broadcast %cst_17 : f32 to vector<8x128xf32>
    %21 = arith.maximumf %19, %20 : vector<8x128xf32>
    %c0_18 = arith.constant 0 : index
    %c0_19 = arith.constant 0 : index
    %22 = vector.load %arg8[%c0_18, %c0_19] : memref<128x128xf32, #tpu.memory_space<vmem>>, vector<128x128xf32>
    %cst_20 = arith.constant dense<0.000000e+00> : vector<8x128xf32>
    %23 = tpu.matmul %21, %22, %cst_20 {dimension_numbers = #tpu.dot_dimension_numbers<[1], [0], [0], [1], [0, 0, 1, 1], [], []>} : vector<8x128xf32>, vector<128x128xf32>, vector<8x128xf32> -> vector<8x128xf32>
    %c0_21 = arith.constant 0 : index
    %c0_22 = arith.constant 0 : index
    %24 = vector.load %arg9[%c0_21, %c0_22] : memref<1x128xf32, #tpu.memory_space<vmem>>, vector<1x128xf32>
    %25 = vector.broadcast %24 : vector<1x128xf32> to vector<8x128xf32>
    %26 = arith.addf %23, %25 : vector<8x128xf32>
    %c0_23 = arith.constant 0 : index
    %c0_24 = arith.constant 0 : index
    %27 = vector.load %arg10[%c0_23, %c0_24] : memref<8x128xf32, #tpu.memory_space<vmem>>, vector<8x128xf32>
    tpu.vector_store %arg10[%c0_23, %c0_24], %26 {strides = array<i32>} : memref<8x128xf32, #tpu.memory_space<vmem>>, vector<8x128xf32>,
    return
  }
  func.func @transform_0(%arg0: i32) -> (i32, i32) {
    %c0_i32 = arith.constant 0 : i32
    %c0_i32_0 = arith.constant 0 : i32
    return %arg0, %c0_i32 : i32, i32
  }
  func.func @transform_1(%arg0: i32) -> (i32, i32) {
    %c0_i32 = arith.constant 0 : i32
    %c0_i32_0 = arith.constant 0 : i32
    %c0_i32_1 = arith.constant 0 : i32
    return %c0_i32, %c0_i32_0 : i32, i32
  }
  func.func @transform_2(%arg0: i32) -> (i32, i32) {
    %c0_i32 = arith.constant 0 : i32
    %c0_i32_0 = arith.constant 0 : i32
    %c0_i32_1 = arith.constant 0 : i32
    return %c0_i32, %c0_i32_0 : i32, i32
  }
  func.func @transform_3(%arg0: i32) -> (i32, i32) {
    %c0_i32 = arith.constant 0 : i32
    %c0_i32_0 = arith.constant 0 : i32
    %c0_i32_1 = arith.constant 0 : i32
    return %c0_i32, %c0_i32_0 : i32, i32
  }
  func.func @transform_4(%arg0: i32) -> (i32, i32) {
    %c0_i32 = arith.constant 0 : i32
    %c0_i32_0 = arith.constant 0 : i32
    %c0_i32_1 = arith.constant 0 : i32
    return %c0_i32, %c0_i32_0 : i32, i32
  }
  func.func @transform_5(%arg0: i32) -> (i32, i32) {
    %c0_i32 = arith.constant 0 : i32
    %c0_i32_0 = arith.constant 0 : i32
    %c0_i32_1 = arith.constant 0 : i32
    return %c0_i32, %c0_i32_0 : i32, i32
  }
  func.func @transform_6(%arg0: i32) -> (i32, i32) {
    %c0_i32 = arith.constant 0 : i32
    %c0_i32_0 = arith.constant 0 : i32
    %c0_i32_1 = arith.constant 0 : i32
    return %c0_i32, %c0_i32_0 : i32, i32
  }
  func.func @transform_7(%arg0: i32) -> (i32, i32) {
    %c0_i32 = arith.constant 0 : i32
    %c0_i32_0 = arith.constant 0 : i32
    %c0_i32_1 = arith.constant 0 : i32
    return %c0_i32, %c0_i32_0 : i32, i32
  }
  func.func @transform_8(%arg0: i32) -> (i32, i32) {
    %c0_i32 = arith.constant 0 : i32
    %c0_i32_0 = arith.constant 0 : i32
    %c0_i32_1 = arith.constant 0 : i32
    return %c0_i32, %c0_i32_0 : i32, i32
  }
  func.func @transform_9(%arg0: i32) -> (i32, i32) {
    %c0_i32 = arith.constant 0 : i32
    %c0_i32_0 = arith.constant 0 : i32
    return %arg0, %c0_i32 : i32, i32
  }
}

</mosaic_0001>

<bundles_post_ra>
// kernel: ff_forward.1
= control target key start
LH: loop header
LB: loop body
LE: loop exit
PB: predicated region body
PF: predicated region fallthrough
CT: control target
= control target key end

     0   :  { %14 = vsyncpa [#allocation3], 0  ;;  %s984_s0 = inlined_call_operand.vmem [shape: f32[8,128], index: 0, kind: input, shape index: {}]   ;;  %s985_s1 = inlined_call_operand.hbm [shape: f32[128,128], index: 1, kind: input, shape index: {}]   ;;  %s986_s2 = inlined_call_operand.vmem [shape: f32[1,128], index: 2, kind: input, shape index: {}]   ;;  %s987_s3 = inlined_call_operand.hbm [shape: f32[128,128], index: 3, kind: input, shape index: {}]   ;;  %s988_s4 = inlined_call_operand.vmem [shape: f32[1,128], index: 4, kind: input, shape index: {}]   ;;  %s989_s5 = inlined_call_operand.hbm [shape: f32[128,128], index: 5, kind: input, shape index: {}]   ;;  %s990_s6 = inlined_call_operand.vmem [shape: f32[1,128], index: 6, kind: input, shape index: {}]   ;;  %s991_s7 = inlined_call_operand.hbm [shape: f32[128,128], index: 7, kind: input, shape index: {}]   ;;  %s992_s8 = inlined_call_operand.vmem [shape: f32[1,128], index: 8, kind: input, shape index: {}]   ;;  %s993_s9 = inlined_call_operand.hbm [shape: f32[8,128], index: 9, kind: output, shape index: {}]  }
   0x1   :  { %15 = vsyncpa [#allocation6], 0 }
   0x2   :  { %16 = vsyncpa [#allocation9], 0 }
   0x3   :  { %17 = vsyncpa [#allocation4], 0  ;;  %s811_s30 = smov [#allocation5]   ;;  %s812_s11 = smov [#allocation2]  }
   0x4   :  { %s39_s10 = sshll.u32 %s811_s30, 4  ;;  %s25_s12 = sshll.u32 %s812_s11, 4  ;;  %s40_s10 = int_to_ptr.vmem [resolvable:$true] %s39_s10  ;;  %s26_s12 = int_to_ptr.vmem [resolvable:$true] %s25_s12 }
   0x5   :  { %s711_s13 = scalar_lea.vmem %s40_s10, 2048  ;;  %p716_p1 = scmp.lt.s32.totalorder %s40_s10, %s40_s10 }
   0x6   :  { %p712_p0 = scmp.ne.s32.totalorder %s40_s10, %s711_s13  ;;  %p717_p2 = scmp.lt.s32.totalorder %s711_s13, %s711_s13 }
   0x8   :  { %p718_p3 = por %p717_p2, %p716_p1 }
   0xa   :  { %p719_p4 = pnand %p718_p3, %p712_p0 }
   0xc   :  { %722 = shalt.err (!%p719_p4)
}
   0xd   :  { %s813_s14 = smov 128   ;;  %s814_s15 = smov 8  }
   0xe   :  { %45 = dma.hbm_to_vmem [thread:$0]  %s987_s3, 2048, %s40_s10, [#allocation6], %s813_s14, %s813_s14, %s814_s15  }
   0xf   :  { %s731_s18 = scalar_lea.vmem %s26_s12, 2048  ;;  %p736_p6 = scmp.lt.s32.totalorder %s26_s12, %s26_s12 }
  0x10   :  { %p732_p5 = scmp.ne.s32.totalorder %s26_s12, %s731_s18  ;;  %p737_p7 = scmp.lt.s32.totalorder %s731_s18, %s731_s18 }
  0x12   :  { %p738_p8 = por %p737_p7, %p736_p6 }
  0x14   :  { %p739_p9 = pnand %p738_p8, %p732_p5 }
  0x16   :  { %742 = shalt.err (!%p739_p9)
}
  0x17   :  { %31 = dma.hbm_to_vmem [thread:$0]  %s985_s1, 2048, %s26_s12, [#allocation3], %s813_s14, %s813_s14, %s814_s15  }
  0x18   :  { %s815_s21 = smov [#allocation7]   ;;  %s816_s23 = smov [#allocation8]  }
  0x19   :  { %s53_s22 = sshll.u32 %s815_s21, 4  ;;  %s67_s24 = sshll.u32 %s816_s23, 4  ;;  %s54_s22 = int_to_ptr.vmem [resolvable:$true] %s53_s22  ;;  %s68_s24 = int_to_ptr.vmem [resolvable:$true] %s67_s24 }
  0x1a   :  { %s751_s3 = scalar_lea.vmem %s54_s22, 2048  ;;  %p756_p11 = scmp.lt.s32.totalorder %s54_s22, %s54_s22 }
  0x1b   :  { %p752_p10 = scmp.ne.s32.totalorder %s54_s22, %s751_s3  ;;  %p757_p12 = scmp.lt.s32.totalorder %s751_s3, %s751_s3 }
  0x1d   :  { %p758_p13 = por %p757_p12, %p756_p11 }
  0x1f   :  { %p759_p0 = pnand %p758_p13, %p752_p10 }
  0x21   :  { %762 = shalt.err (!%p759_p0)
}
  0x22   :  { %59 = dma.hbm_to_vmem [thread:$0]  %s989_s5, 2048, %s54_s22, [#allocation6], %s813_s14, %s813_s14, %s814_s15  }
  0x23   :  { %s771_s1 = scalar_lea.vmem %s68_s24, 2048  ;;  %p776_p2 = scmp.lt.s32.totalorder %s68_s24, %s68_s24 }
  0x24   :  { %p772_p1 = scmp.ne.s32.totalorder %s68_s24, %s771_s1  ;;  %p777_p3 = scmp.lt.s32.totalorder %s771_s1, %s771_s1 }
  0x26   :  { %p778_p4 = por %p777_p3, %p776_p2 }
  0x28   :  { %p779_p5 = pnand %p778_p4, %p772_p1 }
  0x2a   :  { %782 = shalt.err (!%p779_p5)
}
  0x2b   :  { %73 = dma.hbm_to_vmem [thread:$0]  %s991_s7, 2048, %s68_s24, [#allocation9], %s813_s14, %s813_s14, %s814_s15  }
  0x2c   :  { %803 = dma.done.wait [#allocation3], 2048  }
  0x2d   :  { %804 = vsyncadd [#allocation3], 4294965248 }
  0x2e   :  { %805 = dma.done.wait [#allocation6], 4096  }
  0x2f   :  { %806 = vsyncadd [#allocation6], 4294963200 }
  0x30   :  { %807 = dma.done.wait [#allocation9], 2048  }
  0x31   :  { %808 = vsyncadd [#allocation9], 4294965248  ;;  %v817_v0 = vmov 0.0   ;;  %vm818_vm0 = vmmov 0   ;;  %v104_v1 = vld [vmem:[#allocation2 + $0x78] sm:$0xff]  ;;  %v103_v2 = vld [vmem:[#allocation2 + $0x70] sm:$0xff] }
  0x32   :  { %554 = vmatprep.subr.mxu0 %v817_v0  ;;  %586 = vmatprep.mubr.msk.f32.mxu0 %vm818_vm0, %v817_v0  ;;  %v102_v3 = vld [vmem:[#allocation2 + $0x68] sm:$0xff]  ;;  %v101_v4 = vld [vmem:[#allocation2 + $0x60] sm:$0xff]  ;;  %v198_v5 = vld [vmem:[#allocation5 + $0x78] sm:$0xff]  ;;  %s819_s13 = smov [#allocation10]  }
  0x33   :  { %589 = vmatprep.subr.mxu1 %v817_v0  ;;  %621 = vmatprep.mubr.msk.f32.mxu1 %vm818_vm0, %v817_v0  ;;  %v100_v6 = vld [vmem:[#allocation2 + $0x58] sm:$0xff]  ;;  %v197_v7 = vld [vmem:[#allocation5 + $0x70] sm:$0xff]  ;;  %v196_v8 = vld [vmem:[#allocation5 + $0x68] sm:$0xff]  ;;  %s471_s14 = sshll.u32 %s819_s13, 4  ;;  %s472_s14 = int_to_ptr.vmem [resolvable:$true] %s471_s14 }
  0x34   :  { %555 = vmatpush3.msra.mxu0 %v104_v1  ;;  %590 = vmatpush3.msra.mxu1 %v198_v5  ;;  %v99_v9 = vld [vmem:[#allocation2 + $0x50] sm:$0xff]  ;;  %v195_v10 = vld [vmem:[#allocation5 + $0x60] sm:$0xff]  ;;  %v98_v11 = vld [vmem:[#allocation2 + $0x48] sm:$0xff]  ;;  %s783_s15 = scalar_lea.vmem %s472_s14, 128  ;;  %p788_p7 = scmp.lt.s32.totalorder %s472_s14, %s472_s14 }
  0x35   :  { %556 = vmatprep.subr.mxu0 %v817_v0  ;;  %591 = vmatprep.subr.mxu1 %v817_v0  ;;  %v194_v12 = vld [vmem:[#allocation5 + $0x58] sm:$0xff]  ;;  %v97_v13 = vld [vmem:[#allocation2 + $0x40] sm:$0xff]  ;;  %v193_v14 = vld [vmem:[#allocation5 + $0x50] sm:$0xff]  ;;  %p784_p6 = scmp.ne.s32.totalorder %s472_s14, %s783_s15  ;;  %p789_p8 = scmp.lt.s32.totalorder %s783_s15, %s783_s15 }
  0x36   :  { %557 = vmatpush3.msra.mxu0 %v103_v2  ;;  %592 = vmatpush3.msra.mxu1 %v197_v7  ;;  %v96_v15 = vld [vmem:[#allocation2 + $0x38] sm:$0xff]  ;;  %v192_v16 = vld [vmem:[#allocation5 + $0x48] sm:$0xff]  ;;  %v95_v17 = vld [vmem:[#allocation2 + $0x30] sm:$0xff] }
  0x37   :  { %558 = vmatprep.subr.mxu0 %v817_v0  ;;  %593 = vmatprep.subr.mxu1 %v817_v0  ;;  %v191_v18 = vld [vmem:[#allocation5 + $0x40] sm:$0xff]  ;;  %v94_v19 = vld [vmem:[#allocation2 + $0x28] sm:$0xff]  ;;  %v190_v20 = vld [vmem:[#allocation5 + $0x38] sm:$0xff]  ;;  %p790_p9 = por %p789_p8, %p788_p7 }
  0x38   :  { %559 = vmatpush3.msra.mxu0 %v102_v3  ;;  %594 = vmatpush3.msra.mxu1 %v196_v8  ;;  %v93_v21 = vld [vmem:[#allocation2 + $0x20] sm:$0xff]  ;;  %v189_v22 = vld [vmem:[#allocation5 + $0x30] sm:$0xff]  ;;  %v92_v23 = vld [vmem:[#allocation2 + $0x18] sm:$0xff] }
  0x39   :  { %560 = vmatprep.subr.mxu0 %v817_v0  ;;  %595 = vmatprep.subr.mxu1 %v817_v0  ;;  %v188_v24 = vld [vmem:[#allocation5 + $0x28] sm:$0xff]  ;;  %v91_v25 = vld [vmem:[#allocation2 + $0x10] sm:$0xff]  ;;  %v187_v26 = vld [vmem:[#allocation5 + $0x20] sm:$0xff]  ;;  %p791_p10 = pnand %p790_p9, %p784_p6 }
  0x3a   :  { %561 = vmatpush3.msra.mxu0 %v101_v4  ;;  %596 = vmatpush3.msra.mxu1 %v195_v10  ;;  %v90_v27 = vld [vmem:[#allocation2 + $0x8] sm:$0xff]  ;;  %v186_v28 = vld [vmem:[#allocation5 + $0x18] sm:$0xff]  ;;  %v89_v29 = vld [vmem:[#allocation2] sm:$0xff] }
  0x3b   :  { %562 = vmatprep.subr.mxu0 %v817_v0  ;;  %597 = vmatprep.subr.mxu1 %v817_v0  ;;  %v88_v30 = vld [vmem:[%s984_s0] sm:$0xff]  ;;  %v185_v31 = vld [vmem:[#allocation5 + $0x10] sm:$0xff]  ;;  %v184_v32 = vld [vmem:[#allocation5 + $0x8] sm:$0xff] }
  0x3c   :  { %563 = vmatpush3.msra.mxu0 %v100_v6  ;;  %598 = vmatpush3.msra.mxu1 %v194_v12  ;;  %v183_v33 = vld [vmem:[#allocation5] sm:$0xff]  ;;  %v292_v34 = vld [vmem:[#allocation7 + $0x78] sm:$0xff]  ;;  %v291_v35 = vld [vmem:[#allocation7 + $0x70] sm:$0xff] }
  0x3d   :  { %564 = vmatprep.subr.mxu0 %v817_v0  ;;  %599 = vmatprep.subr.mxu1 %v817_v0  ;;  %v290_v36 = vld [vmem:[#allocation7 + $0x68] sm:$0xff]  ;;  %v289_v37 = vld [vmem:[#allocation7 + $0x60] sm:$0xff]  ;;  %v288_v38 = vld [vmem:[#allocation7 + $0x58] sm:$0xff] }
  0x3e   :  { %565 = vmatpush3.msra.mxu0 %v99_v9  ;;  %600 = vmatpush3.msra.mxu1 %v193_v14  ;;  %v287_v39 = vld [vmem:[#allocation7 + $0x50] sm:$0xff]  ;;  %v286_v40 = vld [vmem:[#allocation7 + $0x48] sm:$0xff]  ;;  %v285_v41 = vld [vmem:[#allocation7 + $0x40] sm:$0xff] }
  0x3f   :  { %566 = vmatprep.subr.mxu0 %v817_v0  ;;  %601 = vmatprep.subr.mxu1 %v817_v0  ;;  %v284_v42 = vld [vmem:[#allocation7 + $0x38] sm:$0xff]  ;;  %v283_v43 = vld [vmem:[#allocation7 + $0x30] sm:$0xff]  ;;  %v282_v44 = vld [vmem:[#allocation7 + $0x28] sm:$0xff] }
  0x40   :  { %567 = vmatpush3.msra.mxu0 %v98_v11  ;;  %602 = vmatpush3.msra.mxu1 %v192_v16  ;;  %v281_v45 = vld [vmem:[#allocation7 + $0x20] sm:$0xff]  ;;  %v280_v46 = vld [vmem:[#allocation7 + $0x18] sm:$0xff]  ;;  %v279_v52 = vld [vmem:[#allocation7 + $0x10] sm:$0xff] }
  0x41   :  { %568 = vmatprep.subr.mxu0 %v817_v0  ;;  %603 = vmatprep.subr.mxu1 %v817_v0  ;;  %v482_v47 = vld [vmem:[%s986_s2] ss:$0 sm:$0xff]  ;;  %v278_v53 = vld [vmem:[#allocation7 + $0x8] sm:$0xff]  ;;  %v386_v55 = vld [vmem:[#allocation8 + $0x78] sm:$0xff] }
  0x42   :  { %569 = vmatpush3.msra.mxu0 %v97_v13  ;;  %604 = vmatpush3.msra.mxu1 %v191_v18  ;;  %v277_v54 = vld [vmem:[#allocation7] sm:$0xff]  ;;  %v385_v56 = vld [vmem:[#allocation8 + $0x70] sm:$0xff]  ;;  %v384_v57 = vld [vmem:[#allocation8 + $0x68] sm:$0xff] }
  0x43   :  { %570 = vmatprep.subr.mxu0 %v817_v0  ;;  %605 = vmatprep.subr.mxu1 %v817_v0  ;;  %v383_v58 = vld [vmem:[#allocation8 + $0x60] sm:$0xff]  ;;  %v382_v59 = vld [vmem:[#allocation8 + $0x58] sm:$0xff]  ;;  %v381_v60 = vld [vmem:[#allocation8 + $0x50] sm:$0xff] }
  0x44   :  { %571 = vmatpush3.msra.mxu0 %v96_v15  ;;  %606 = vmatpush3.msra.mxu1 %v190_v20  ;;  %v380_v61 = vld [vmem:[#allocation8 + $0x48] sm:$0xff]  ;;  %v379_v62 = vld [vmem:[#allocation8 + $0x40] sm:$0xff]  ;;  %v378_v63 = vld [vmem:[#allocation8 + $0x38] sm:$0xff] }
  0x45   :  { %572 = vmatprep.subr.mxu0 %v817_v0  ;;  %607 = vmatprep.subr.mxu1 %v817_v0  ;;  %v377_v1 = vld [vmem:[#allocation8 + $0x30] sm:$0xff]  ;;  %v376_v2 = vld [vmem:[#allocation8 + $0x28] sm:$0xff]  ;;  %v375_v3 = vld [vmem:[#allocation8 + $0x20] sm:$0xff] }
  0x46   :  { %573 = vmatpush3.msra.mxu0 %v95_v17  ;;  %608 = vmatpush3.msra.mxu1 %v189_v22  ;;  %v374_v4 = vld [vmem:[#allocation8 + $0x18] sm:$0xff]  ;;  %v483_v5 = vld [vmem:[%s988_s4] ss:$0 sm:$0xff]  ;;  %v373_v10 = vld [vmem:[#allocation8 + $0x10] sm:$0xff] }
  0x47   :  { %574 = vmatprep.subr.mxu0 %v817_v0  ;;  %609 = vmatprep.subr.mxu1 %v817_v0  ;;  %v372_v11 = vld [vmem:[#allocation8 + $0x8] sm:$0xff]  ;;  %v371_v12 = vld [vmem:[#allocation8] sm:$0xff] }
  0x48   :  { %575 = vmatpush3.msra.mxu0 %v94_v19  ;;  %610 = vmatpush3.msra.mxu1 %v188_v24  ;;  %v484_v13 = vld [vmem:[%s990_s6] ss:$0 sm:$0xff] }
  0x49   :  { %576 = vmatprep.subr.mxu0 %v817_v0  ;;  %611 = vmatprep.subr.mxu1 %v817_v0  ;;  %v485_v18 = vld [vmem:[%s992_s8] ss:$0 sm:$0xff] }
  0x4a   :  { %577 = vmatpush3.msra.mxu0 %v93_v21  ;;  %612 = vmatpush3.msra.mxu1 %v187_v26 }
  0x4b   :  { %578 = vmatprep.subr.mxu0 %v817_v0  ;;  %613 = vmatprep.subr.mxu1 %v817_v0 }
  0x4c   :  { %579 = vmatpush3.msra.mxu0 %v92_v23  ;;  %614 = vmatpush3.msra.mxu1 %v186_v28 }
  0x4d   :  { %580 = vmatprep.subr.mxu0 %v817_v0  ;;  %615 = vmatprep.subr.mxu1 %v817_v0 }
  0x4e   :  { %581 = vmatpush3.msra.mxu0 %v91_v25  ;;  %616 = vmatpush3.msra.mxu1 %v185_v31 }
  0x4f   :  { %582 = vmatprep.subr.mxu0 %v817_v0  ;;  %617 = vmatprep.subr.mxu1 %v817_v0 }
  0x50   :  { %583 = vmatpush3.msra.mxu0 %v90_v27  ;;  %618 = vmatpush3.msra.mxu1 %v184_v32 }
  0x51   :  { %584 = vmatprep.subr.mxu0 %v817_v0  ;;  %619 = vmatprep.subr.mxu1 %v817_v0 }
  0x52   :  { %585 = vmatpush3.msra.mxu0 %v89_v29  ;;  %620 = vmatpush3.msra.mxu1 %v183_v33 }
  0x53   :  { %587 = vmatmul.mubr.f32.vlgmr.msra.gmra.mxu0 %v88_v30  ;;  %624 = vmatprep.subr.mxu0 %v817_v0 }
  0x54   :  { %656 = vmatprep.mubr.msk.f32.mxu0 %vm818_vm0, %v817_v0  ;;  %659 = vmatprep.subr.mxu1 %v817_v0 }
  0x55   :  { %625 = vmatpush3.msra.mxu0 %v292_v34 }
  0x56   :  { %626 = vmatprep.subr.mxu0 %v817_v0 }
  0x57   :  { %627 = vmatpush3.msra.mxu0 %v291_v35 }
  0x58   :  { %628 = vmatprep.subr.mxu0 %v817_v0 }
  0x59   :  { %629 = vmatpush3.msra.mxu0 %v290_v36 }
  0x5a   :  { %630 = vmatprep.subr.mxu0 %v817_v0 }
  0x5b   :  { %631 = vmatpush3.msra.mxu0 %v289_v37 }
  0x5c   :  { %632 = vmatprep.subr.mxu0 %v817_v0 }
  0x5d   :  { %633 = vmatpush3.msra.mxu0 %v288_v38 }
  0x5e   :  { %634 = vmatprep.subr.mxu0 %v817_v0 }
  0x5f   :  { %635 = vmatpush3.msra.mxu0 %v287_v39 }
  0x60   :  { %636 = vmatprep.subr.mxu0 %v817_v0 }
  0x61   :  { %637 = vmatpush3.msra.mxu0 %v286_v40 }
  0x62   :  { %638 = vmatprep.subr.mxu0 %v817_v0 }
  0x63   :  { %639 = vmatpush3.msra.mxu0 %v285_v41 }
  0x64   :  { %640 = vmatprep.subr.mxu0 %v817_v0 }
  0x65   :  { %641 = vmatpush3.msra.mxu0 %v284_v42 }
  0x66   :  { %642 = vmatprep.subr.mxu0 %v817_v0 }
  0x67   :  { %643 = vmatpush3.msra.mxu0 %v283_v43 }
  0x68   :  { %644 = vmatprep.subr.mxu0 %v817_v0 }
  0x69   :  { %645 = vmatpush3.msra.mxu0 %v282_v44 }
  0x6a   :  { %646 = vmatprep.subr.mxu0 %v817_v0 }
  0x6b   :  { %647 = vmatpush3.msra.mxu0 %v281_v45 }
  0x6c   :  { %648 = vmatprep.subr.mxu0 %v817_v0 }
  0x6d   :  { %649 = vmatpush3.msra.mxu0 %v280_v46 }
  0x6e   :  { %650 = vmatprep.subr.mxu0 %v817_v0 }
  0x6f   :  { %651 = vmatpush3.msra.mxu0 %v279_v52 }
  0x70   :  { %652 = vmatprep.subr.mxu0 %v817_v0 }
  0x71   :  { %653 = vmatpush3.msra.mxu0 %v278_v53 }
  0x72   :  { %654 = vmatprep.subr.mxu0 %v817_v0 }
  0x73   :  { %655 = vmatpush3.msra.mxu0 %v277_v54 }
 0x113   :  { %v178_v48 = vpop.f32.mrf.mxu0 }
 0x114   :  { %v179_v49 = vadd.f32 %v482_v47, %v178_v48 }
 0x115   :  { %v588_v50 = vpop.f32.mrf.mxu0 }
 0x116   :  { %v182_v51 = vmax.f32 %v179_v49, 0.0 }
 0x118   :  { %622 = vmatmul.mubr.f32.vlgmr.msra.gmra.mxu1 %v182_v51 }
 0x119   :  { %691 = vmatprep.mubr.msk.f32.mxu1 %vm818_vm0, %v817_v0  ;;  %660 = vmatpush3.msra.mxu1 %v386_v55 }
 0x11a   :  { %661 = vmatprep.subr.mxu1 %v817_v0 }
 0x11b   :  { %662 = vmatpush3.msra.mxu1 %v385_v56 }
 0x11c   :  { %663 = vmatprep.subr.mxu1 %v817_v0 }
 0x11d   :  { %664 = vmatpush3.msra.mxu1 %v384_v57 }
 0x11e   :  { %665 = vmatprep.subr.mxu1 %v817_v0 }
 0x11f   :  { %666 = vmatpush3.msra.mxu1 %v383_v58 }
 0x120   :  { %667 = vmatprep.subr.mxu1 %v817_v0 }
 0x121   :  { %668 = vmatpush3.msra.mxu1 %v382_v59 }
 0x122   :  { %669 = vmatprep.subr.mxu1 %v817_v0 }
 0x123   :  { %670 = vmatpush3.msra.mxu1 %v381_v60 }
 0x124   :  { %671 = vmatprep.subr.mxu1 %v817_v0 }
 0x125   :  { %672 = vmatpush3.msra.mxu1 %v380_v61 }
 0x126   :  { %673 = vmatprep.subr.mxu1 %v817_v0 }
 0x127   :  { %674 = vmatpush3.msra.mxu1 %v379_v62 }
 0x128   :  { %675 = vmatprep.subr.mxu1 %v817_v0 }
 0x129   :  { %676 = vmatpush3.msra.mxu1 %v378_v63 }
 0x12a   :  { %677 = vmatprep.subr.mxu1 %v817_v0 }
 0x12b   :  { %678 = vmatpush3.msra.mxu1 %v377_v1 }
 0x12c   :  { %679 = vmatprep.subr.mxu1 %v817_v0 }
 0x12d   :  { %680 = vmatpush3.msra.mxu1 %v376_v2 }
 0x12e   :  { %681 = vmatprep.subr.mxu1 %v817_v0 }
 0x12f   :  { %682 = vmatpush3.msra.mxu1 %v375_v3 }
 0x130   :  { %683 = vmatprep.subr.mxu1 %v817_v0 }
 0x131   :  { %684 = vmatpush3.msra.mxu1 %v374_v4 }
 0x132   :  { %685 = vmatprep.subr.mxu1 %v817_v0 }
 0x133   :  { %686 = vmatpush3.msra.mxu1 %v373_v10 }
 0x134   :  { %687 = vmatprep.subr.mxu1 %v817_v0 }
 0x135   :  { %688 = vmatpush3.msra.mxu1 %v372_v11 }
 0x136   :  { %689 = vmatprep.subr.mxu1 %v817_v0 }
 0x137   :  { %690 = vmatpush3.msra.mxu1 %v371_v12 }
 0x1d8   :  { %v272_v6 = vpop.f32.mrf.mxu1 }
 0x1d9   :  { %v273_v7 = vadd.f32 %v483_v5, %v272_v6 }
 0x1da   :  { %v623_v8 = vpop.f32.mrf.mxu1 }
 0x1db   :  { %v276_v9 = vmax.f32 %v273_v7, 0.0 }
 0x1dd   :  { %657 = vmatmul.mubr.f32.vlgmr.msra.gmra.mxu0 %v276_v9 }
 0x29d   :  { %v366_v14 = vpop.f32.mrf.mxu0 }
 0x29e   :  { %v367_v15 = vadd.f32 %v484_v13, %v366_v14 }
 0x29f   :  { %v658_v16 = vpop.f32.mrf.mxu0 }
 0x2a0   :  { %v370_v17 = vmax.f32 %v367_v15, 0.0 }
 0x2a2   :  { %692 = vmatmul.mubr.f32.vlgmr.msra.gmra.mxu1 %v370_v17 }
 0x362   :  { %v460_v19 = vpop.f32.mrf.mxu1 }
 0x363   :  { %v461_v20 = vadd.f32 %v485_v18, %v460_v19 }
 0x364   :  { %v693_v0 = vpop.f32.mrf.mxu1 }
 0x365   :  { %464 = vst [vmem:[#allocation10] sm:$0xff] %v461_v20 }
 0x366   :  { %794 = shalt.err (!%p791_p10)
}
 0x367   :  { %474 = dma.vmem_to_hbm [thread:$0]  %s472_s14, 128, %s993_s9, [#allocation4]  }
 0x368   :  { %809 = dma.done.wait [#allocation4], 128  }
 0x369   :  { %810 = vsyncadd [#allocation4], 4294967168 }
 0x36a   :  { %478 = vsyncpa [#allocation3], 1 }
 0x36b   :  { %479 = vsyncpa [#allocation6], 1 }
 0x36c   :  { %480 = vsyncpa [#allocation9], 1 }
 0x36d   :  { %481 = vsyncpa [#allocation4], 1 }

// kernel: ff_forward.1
= control target key start
LH: loop header
LB: loop body
LE: loop exit
PB: predicated region body
PF: predicated region fallthrough
CT: control target
= control target key end

     0   :  { %14 = vsyncpa [#allocation3], 0  ;;  %s984_s0 = inlined_call_operand.vmem [shape: f32[8,128], index: 0, kind: input, shape index: {}]   ;;  %s985_s1 = inlined_call_operand.hbm [shape: f32[128,128], index: 1, kind: input, shape index: {}]   ;;  %s986_s2 = inlined_call_operand.vmem [shape: f32[1,128], index: 2, kind: input, shape index: {}]   ;;  %s987_s3 = inlined_call_operand.hbm [shape: f32[128,128], index: 3, kind: input, shape index: {}]   ;;  %s988_s4 = inlined_call_operand.vmem [shape: f32[1,128], index: 4, kind: input, shape index: {}]   ;;  %s989_s5 = inlined_call_operand.hbm [shape: f32[128,128], index: 5, kind: input, shape index: {}]   ;;  %s990_s6 = inlined_call_operand.vmem [shape: f32[1,128], index: 6, kind: input, shape index: {}]   ;;  %s991_s7 = inlined_call_operand.hbm [shape: f32[128,128], index: 7, kind: input, shape index: {}]   ;;  %s992_s8 = inlined_call_operand.vmem [shape: f32[1,128], index: 8, kind: input, shape index: {}]   ;;  %s993_s9 = inlined_call_operand.hbm [shape: f32[8,128], index: 9, kind: output, shape index: {}]  }
   0x1   :  { %15 = vsyncpa [#allocation6], 0 }
   0x2   :  { %16 = vsyncpa [#allocation9], 0 }
   0x3   :  { %17 = vsyncpa [#allocation4], 0  ;;  %s811_s30 = smov [#allocation5]   ;;  %s812_s11 = smov [#allocation2]  }
   0x4   :  { %s39_s10 = sshll.u32 %s811_s30, 4  ;;  %s25_s12 = sshll.u32 %s812_s11, 4  ;;  %s40_s10 = int_to_ptr.vmem [resolvable:$true] %s39_s10  ;;  %s26_s12 = int_to_ptr.vmem [resolvable:$true] %s25_s12 }
   0x5   :  { %s711_s13 = scalar_lea.vmem %s40_s10, 2048  ;;  %p716_p1 = scmp.lt.s32.totalorder %s40_s10, %s40_s10 }
   0x6   :  { %p712_p0 = scmp.ne.s32.totalorder %s40_s10, %s711_s13  ;;  %p717_p2 = scmp.lt.s32.totalorder %s711_s13, %s711_s13 }
   0x8   :  { %p718_p3 = por %p717_p2, %p716_p1 }
   0xa   :  { %p719_p4 = pnand %p718_p3, %p712_p0 }
   0xc   :  { %722 = shalt.err (!%p719_p4)
}
   0xd   :  { %s813_s14 = smov 128   ;;  %s814_s15 = smov 8  }
   0xe   :  { %45 = dma.hbm_to_vmem [thread:$0]  %s987_s3, 2048, %s40_s10, [#allocation6], %s813_s14, %s813_s14, %s814_s15  }
   0xf   :  { %s731_s18 = scalar_lea.vmem %s26_s12, 2048  ;;  %p736_p6 = scmp.lt.s32.totalorder %s26_s12, %s26_s12 }
  0x10   :  { %p732_p5 = scmp.ne.s32.totalorder %s26_s12, %s731_s18  ;;  %p737_p7 = scmp.lt.s32.totalorder %s731_s18, %s731_s18 }
  0x12   :  { %p738_p8 = por %p737_p7, %p736_p6 }
  0x14   :  { %p739_p9 = pnand %p738_p8, %p732_p5 }
  0x16   :  { %742 = shalt.err (!%p739_p9)
}
  0x17   :  { %31 = dma.hbm_to_vmem [thread:$0]  %s985_s1, 2048, %s26_s12, [#allocation3], %s813_s14, %s813_s14, %s814_s15  }
  0x18   :  { %s815_s21 = smov [#allocation7]   ;;  %s816_s23 = smov [#allocation8]  }
  0x19   :  { %s53_s22 = sshll.u32 %s815_s21, 4  ;;  %s67_s24 = sshll.u32 %s816_s23, 4  ;;  %s54_s22 = int_to_ptr.vmem [resolvable:$true] %s53_s22  ;;  %s68_s24 = int_to_ptr.vmem [resolvable:$true] %s67_s24 }
  0x1a   :  { %s751_s3 = scalar_lea.vmem %s54_s22, 2048  ;;  %p756_p11 = scmp.lt.s32.totalorder %s54_s22, %s54_s22 }
  0x1b   :  { %p752_p10 = scmp.ne.s32.totalorder %s54_s22, %s751_s3  ;;  %p757_p12 = scmp.lt.s32.totalorder %s751_s3, %s751_s3 }
  0x1d   :  { %p758_p13 = por %p757_p12, %p756_p11 }
  0x1f   :  { %p759_p0 = pnand %p758_p13, %p752_p10 }
  0x21   :  { %762 = shalt.err (!%p759_p0)
}
  0x22   :  { %59 = dma.hbm_to_vmem [thread:$0]  %s989_s5, 2048, %s54_s22, [#allocation6], %s813_s14, %s813_s14, %s814_s15  }
  0x23   :  { %s771_s1 = scalar_lea.vmem %s68_s24, 2048  ;;  %p776_p2 = scmp.lt.s32.totalorder %s68_s24, %s68_s24 }
  0x24   :  { %p772_p1 = scmp.ne.s32.totalorder %s68_s24, %s771_s1  ;;  %p777_p3 = scmp.lt.s32.totalorder %s771_s1, %s771_s1 }
  0x26   :  { %p778_p4 = por %p777_p3, %p776_p2 }
  0x28   :  { %p779_p5 = pnand %p778_p4, %p772_p1 }
  0x2a   :  { %782 = shalt.err (!%p779_p5)
}
  0x2b   :  { %73 = dma.hbm_to_vmem [thread:$0]  %s991_s7, 2048, %s68_s24, [#allocation9], %s813_s14, %s813_s14, %s814_s15  }
  0x2c   :  { %803 = dma.done.wait [#allocation3], 2048  }
  0x2d   :  { %804 = vsyncadd [#allocation3], 4294965248 }
  0x2e   :  { %805 = dma.done.wait [#allocation6], 4096  }
  0x2f   :  { %806 = vsyncadd [#allocation6], 4294963200 }
  0x30   :  { %807 = dma.done.wait [#allocation9], 2048  }
  0x31   :  { %808 = vsyncadd [#allocation9], 4294965248  ;;  %v817_v0 = vmov 0.0   ;;  %vm818_vm0 = vmmov 0   ;;  %v104_v1 = vld [vmem:[#allocation2 + $0x78] sm:$0xff]  ;;  %v103_v2 = vld [vmem:[#allocation2 + $0x70] sm:$0xff] }
  0x32   :  { %554 = vmatprep.subr.mxu0 %v817_v0  ;;  %586 = vmatprep.mubr.msk.f32.mxu0 %vm818_vm0, %v817_v0  ;;  %v102_v3 = vld [vmem:[#allocation2 + $0x68] sm:$0xff]  ;;  %v101_v4 = vld [vmem:[#allocation2 + $0x60] sm:$0xff]  ;;  %v198_v5 = vld [vmem:[#allocation5 + $0x78] sm:$0xff]  ;;  %s819_s13 = smov [#allocation10]  }
  0x33   :  { %589 = vmatprep.subr.mxu1 %v817_v0  ;;  %621 = vmatprep.mubr.msk.f32.mxu1 %vm818_vm0, %v817_v0  ;;  %v100_v6 = vld [vmem:[#allocation2 + $0x58] sm:$0xff]  ;;  %v197_v7 = vld [vmem:[#allocation5 + $0x70] sm:$0xff]  ;;  %v196_v8 = vld [vmem:[#allocation5 + $0x68] sm:$0xff]  ;;  %s471_s14 = sshll.u32 %s819_s13, 4  ;;  %s472_s14 = int_to_ptr.vmem [resolvable:$true] %s471_s14 }
  0x34   :  { %555 = vmatpush3.msra.mxu0 %v104_v1  ;;  %590 = vmatpush3.msra.mxu1 %v198_v5  ;;  %v99_v9 = vld [vmem:[#allocation2 + $0x50] sm:$0xff]  ;;  %v195_v10 = vld [vmem:[#allocation5 + $0x60] sm:$0xff]  ;;  %v98_v11 = vld [vmem:[#allocation2 + $0x48] sm:$0xff]  ;;  %s783_s15 = scalar_lea.vmem %s472_s14, 128  ;;  %p788_p7 = scmp.lt.s32.totalorder %s472_s14, %s472_s14 }
  0x35   :  { %556 = vmatprep.subr.mxu0 %v817_v0  ;;  %591 = vmatprep.subr.mxu1 %v817_v0  ;;  %v194_v12 = vld [vmem:[#allocation5 + $0x58] sm:$0xff]  ;;  %v97_v13 = vld [vmem:[#allocation2 + $0x40] sm:$0xff]  ;;  %v193_v14 = vld [vmem:[#allocation5 + $0x50] sm:$0xff]  ;;  %p784_p6 = scmp.ne.s32.totalorder %s472_s14, %s783_s15  ;;  %p789_p8 = scmp.lt.s32.totalorder %s783_s15, %s783_s15 }
  0x36   :  { %557 = vmatpush3.msra.mxu0 %v103_v2  ;;  %592 = vmatpush3.msra.mxu1 %v197_v7  ;;  %v96_v15 = vld [vmem:[#allocation2 + $0x38] sm:$0xff]  ;;  %v192_v16 = vld [vmem:[#allocation5 + $0x48] sm:$0xff]  ;;  %v95_v17 = vld [vmem:[#allocation2 + $0x30] sm:$0xff] }
  0x37   :  { %558 = vmatprep.subr.mxu0 %v817_v0  ;;  %593 = vmatprep.subr.mxu1 %v817_v0  ;;  %v191_v18 = vld [vmem:[#allocation5 + $0x40] sm:$0xff]  ;;  %v94_v19 = vld [vmem:[#allocation2 + $0x28] sm:$0xff]  ;;  %v190_v20 = vld [vmem:[#allocation5 + $0x38] sm:$0xff]  ;;  %p790_p9 = por %p789_p8, %p788_p7 }
  0x38   :  { %559 = vmatpush3.msra.mxu0 %v102_v3  ;;  %594 = vmatpush3.msra.mxu1 %v196_v8  ;;  %v93_v21 = vld [vmem:[#allocation2 + $0x20] sm:$0xff]  ;;  %v189_v22 = vld [vmem:[#allocation5 + $0x30] sm:$0xff]  ;;  %v92_v23 = vld [vmem:[#allocation2 + $0x18] sm:$0xff] }
  0x39   :  { %560 = vmatprep.subr.mxu0 %v817_v0  ;;  %595 = vmatprep.subr.mxu1 %v817_v0  ;;  %v188_v24 = vld [vmem:[#allocation5 + $0x28] sm:$0xff]  ;;  %v91_v25 = vld [vmem:[#allocation2 + $0x10] sm:$0xff]  ;;  %v187_v26 = vld [vmem:[#allocation5 + $0x20] sm:$0xff]  ;;  %p791_p10 = pnand %p790_p9, %p784_p6 }
  0x3a   :  { %561 = vmatpush3.msra.mxu0 %v101_v4  ;;  %596 = vmatpush3.msra.mxu1 %v195_v10  ;;  %v90_v27 = vld [vmem:[#allocation2 + $0x8] sm:$0xff]  ;;  %v186_v28 = vld [vmem:[#allocation5 + $0x18] sm:$0xff]  ;;  %v89_v29 = vld [vmem:[#allocation2] sm:$0xff] }
  0x3b   :  { %562 = vmatprep.subr.mxu0 %v817_v0  ;;  %597 = vmatprep.subr.mxu1 %v817_v0  ;;  %v88_v30 = vld [vmem:[%s984_s0] sm:$0xff]  ;;  %v185_v31 = vld [vmem:[#allocation5 + $0x10] sm:$0xff]  ;;  %v184_v32 = vld [vmem:[#allocation5 + $0x8] sm:$0xff] }
  0x3c   :  { %563 = vmatpush3.msra.mxu0 %v100_v6  ;;  %598 = vmatpush3.msra.mxu1 %v194_v12  ;;  %v183_v33 = vld [vmem:[#allocation5] sm:$0xff]  ;;  %v292_v34 = vld [vmem:[#allocation7 + $0x78] sm:$0xff]  ;;  %v291_v35 = vld [vmem:[#allocation7 + $0x70] sm:$0xff] }
  0x3d   :  { %564 = vmatprep.subr.mxu0 %v817_v0  ;;  %599 = vmatprep.subr.mxu1 %v817_v0  ;;  %v290_v36 = vld [vmem:[#allocation7 + $0x68] sm:$0xff]  ;;  %v289_v37 = vld [vmem:[#allocation7 + $0x60] sm:$0xff]  ;;  %v288_v38 = vld [vmem:[#allocation7 + $0x58] sm:$0xff] }
  0x3e   :  { %565 = vmatpush3.msra.mxu0 %v99_v9  ;;  %600 = vmatpush3.msra.mxu1 %v193_v14  ;;  %v287_v39 = vld [vmem:[#allocation7 + $0x50] sm:$0xff]  ;;  %v286_v40 = vld [vmem:[#allocation7 + $0x48] sm:$0xff]  ;;  %v285_v41 = vld [vmem:[#allocation7 + $0x40] sm:$0xff] }
  0x3f   :  { %566 = vmatprep.subr.mxu0 %v817_v0  ;;  %601 = vmatprep.subr.mxu1 %v817_v0  ;;  %v284_v42 = vld [vmem:[#allocation7 + $0x38] sm:$0xff]  ;;  %v283_v43 = vld [vmem:[#allocation7 + $0x30] sm:$0xff]  ;;  %v282_v44 = vld [vmem:[#allocation7 + $0x28] sm:$0xff] }
  0x40   :  { %567 = vmatpush3.msra.mxu0 %v98_v11  ;;  %602 = vmatpush3.msra.mxu1 %v192_v16  ;;  %v281_v45 = vld [vmem:[#allocation7 + $0x20] sm:$0xff]  ;;  %v280_v46 = vld [vmem:[#allocation7 + $0x18] sm:$0xff]  ;;  %v279_v52 = vld [vmem:[#allocation7 + $0x10] sm:$0xff] }
  0x41   :  { %568 = vmatprep.subr.mxu0 %v817_v0  ;;  %603 = vmatprep.subr.mxu1 %v817_v0  ;;  %v482_v47 = vld [vmem:[%s986_s2] ss:$0 sm:$0xff]  ;;  %v278_v53 = vld [vmem:[#allocation7 + $0x8] sm:$0xff]  ;;  %v386_v55 = vld [vmem:[#allocation8 + $0x78] sm:$0xff] }
  0x42   :  { %569 = vmatpush3.msra.mxu0 %v97_v13  ;;  %604 = vmatpush3.msra.mxu1 %v191_v18  ;;  %v277_v54 = vld [vmem:[#allocation7] sm:$0xff]  ;;  %v385_v56 = vld [vmem:[#allocation8 + $0x70] sm:$0xff]  ;;  %v384_v57 = vld [vmem:[#allocation8 + $0x68] sm:$0xff] }
  0x43   :  { %570 = vmatprep.subr.mxu0 %v817_v0  ;;  %605 = vmatprep.subr.mxu1 %v817_v0  ;;  %v383_v58 = vld [vmem:[#allocation8 + $0x60] sm:$0xff]  ;;  %v382_v59 = vld [vmem:[#allocation8 + $0x58] sm:$0xff]  ;;  %v381_v60 = vld [vmem:[#allocation8 + $0x50] sm:$0xff] }
  0x44   :  { %571 = vmatpush3.msra.mxu0 %v96_v15  ;;  %606 = vmatpush3.msra.mxu1 %v190_v20  ;;  %v380_v61 = vld [vmem:[#allocation8 + $0x48] sm:$0xff]  ;;  %v379_v62 = vld [vmem:[#allocation8 + $0x40] sm:$0xff]  ;;  %v378_v63 = vld [vmem:[#allocation8 + $0x38] sm:$0xff] }
  0x45   :  { %572 = vmatprep.subr.mxu0 %v817_v0  ;;  %607 = vmatprep.subr.mxu1 %v817_v0  ;;  %v377_v1 = vld [vmem:[#allocation8 + $0x30] sm:$0xff]  ;;  %v376_v2 = vld [vmem:[#allocation8 + $0x28] sm:$0xff]  ;;  %v375_v3 = vld [vmem:[#allocation8 + $0x20] sm:$0xff] }
  0x46   :  { %573 = vmatpush3.msra.mxu0 %v95_v17  ;;  %608 = vmatpush3.msra.mxu1 %v189_v22  ;;  %v374_v4 = vld [vmem:[#allocation8 + $0x18] sm:$0xff]  ;;  %v483_v5 = vld [vmem:[%s988_s4] ss:$0 sm:$0xff]  ;;  %v373_v10 = vld [vmem:[#allocation8 + $0x10] sm:$0xff] }
  0x47   :  { %574 = vmatprep.subr.mxu0 %v817_v0  ;;  %609 = vmatprep.subr.mxu1 %v817_v0  ;;  %v372_v11 = vld [vmem:[#allocation8 + $0x8] sm:$0xff]  ;;  %v371_v12 = vld [vmem:[#allocation8] sm:$0xff] }
  0x48   :  { %575 = vmatpush3.msra.mxu0 %v94_v19  ;;  %610 = vmatpush3.msra.mxu1 %v188_v24  ;;  %v484_v13 = vld [vmem:[%s990_s6] ss:$0 sm:$0xff] }
  0x49   :  { %576 = vmatprep.subr.mxu0 %v817_v0  ;;  %611 = vmatprep.subr.mxu1 %v817_v0  ;;  %v485_v18 = vld [vmem:[%s992_s8] ss:$0 sm:$0xff] }
  0x4a   :  { %577 = vmatpush3.msra.mxu0 %v93_v21  ;;  %612 = vmatpush3.msra.mxu1 %v187_v26 }
  0x4b   :  { %578 = vmatprep.subr.mxu0 %v817_v0  ;;  %613 = vmatprep.subr.mxu1 %v817_v0 }
  0x4c   :  { %579 = vmatpush3.msra.mxu0 %v92_v23  ;;  %614 = vmatpush3.msra.mxu1 %v186_v28 }
  0x4d   :  { %580 = vmatprep.subr.mxu0 %v817_v0  ;;  %615 = vmatprep.subr.mxu1 %v817_v0 }
  0x4e   :  { %581 = vmatpush3.msra.mxu0 %v91_v25  ;;  %616 = vmatpush3.msra.mxu1 %v185_v31 }
  0x4f   :  { %582 = vmatprep.subr.mxu0 %v817_v0  ;;  %617 = vmatprep.subr.mxu1 %v817_v0 }
  0x50   :  { %583 = vmatpush3.msra.mxu0 %v90_v27  ;;  %618 = vmatpush3.msra.mxu1 %v184_v32 }
  0x51   :  { %584 = vmatprep.subr.mxu0 %v817_v0  ;;  %619 = vmatprep.subr.mxu1 %v817_v0 }
  0x52   :  { %585 = vmatpush3.msra.mxu0 %v89_v29  ;;  %620 = vmatpush3.msra.mxu1 %v183_v33 }
  0x53   :  { %587 = vmatmul.mubr.f32.vlgmr.msra.gmra.mxu0 %v88_v30  ;;  %624 = vmatprep.subr.mxu0 %v817_v0 }
  0x54   :  { %656 = vmatprep.mubr.msk.f32.mxu0 %vm818_vm0, %v817_v0  ;;  %659 = vmatprep.subr.mxu1 %v817_v0 }
  0x55   :  { %625 = vmatpush3.msra.mxu0 %v292_v34 }
  0x56   :  { %626 = vmatprep.subr.mxu0 %v817_v0 }
  0x57   :  { %627 = vmatpush3.msra.mxu0 %v291_v35 }
  0x58   :  { %628 = vmatprep.subr.mxu0 %v817_v0 }
  0x59   :  { %629 = vmatpush3.msra.mxu0 %v290_v36 }
  0x5a   :  { %630 = vmatprep.subr.mxu0 %v817_v0 }
  0x5b   :  { %631 = vmatpush3.msra.mxu0 %v289_v37 }
  0x5c   :  { %632 = vmatprep.subr.mxu0 %v817_v0 }
  0x5d   :  { %633 = vmatpush3.msra.mxu0 %v288_v38 }
  0x5e   :  { %634 = vmatprep.subr.mxu0 %v817_v0 }
  0x5f   :  { %635 = vmatpush3.msra.mxu0 %v287_v39 }
  0x60   :  { %636 = vmatprep.subr.mxu0 %v817_v0 }
  0x61   :  { %637 = vmatpush3.msra.mxu0 %v286_v40 }
  0x62   :  { %638 = vmatprep.subr.mxu0 %v817_v0 }
  0x63   :  { %639 = vmatpush3.msra.mxu0 %v285_v41 }
  0x64   :  { %640 = vmatprep.subr.mxu0 %v817_v0 }
  0x65   :  { %641 = vmatpush3.msra.mxu0 %v284_v42 }
  0x66   :  { %642 = vmatprep.subr.mxu0 %v817_v0 }
  0x67   :  { %643 = vmatpush3.msra.mxu0 %v283_v43 }
  0x68   :  { %644 = vmatprep.subr.mxu0 %v817_v0 }
  0x69   :  { %645 = vmatpush3.msra.mxu0 %v282_v44 }
  0x6a   :  { %646 = vmatprep.subr.mxu0 %v817_v0 }
  0x6b   :  { %647 = vmatpush3.msra.mxu0 %v281_v45 }
  0x6c   :  { %648 = vmatprep.subr.mxu0 %v817_v0 }
  0x6d   :  { %649 = vmatpush3.msra.mxu0 %v280_v46 }
  0x6e   :  { %650 = vmatprep.subr.mxu0 %v817_v0 }
  0x6f   :  { %651 = vmatpush3.msra.mxu0 %v279_v52 }
  0x70   :  { %652 = vmatprep.subr.mxu0 %v817_v0 }
  0x71   :  { %653 = vmatpush3.msra.mxu0 %v278_v53 }
  0x72   :  { %654 = vmatprep.subr.mxu0 %v817_v0 }
  0x73   :  { %655 = vmatpush3.msra.mxu0 %v277_v54 }
 0x113   :  { %v178_v48 = vpop.f32.mrf.mxu0 }
 0x114   :  { %v179_v49 = vadd.f32 %v482_v47, %v178_v48 }
 0x115   :  { %v588_v50 = vpop.f32.mrf.mxu0 }
 0x116   :  { %v182_v51 = vmax.f32 %v179_v49, 0.0 }
 0x118   :  { %622 = vmatmul.mubr.f32.vlgmr.msra.gmra.mxu1 %v182_v51 }
 0x119   :  { %691 = vmatprep.mubr.msk.f32.mxu1 %vm818_vm0, %v817_v0  ;;  %660 = vmatpush3.msra.mxu1 %v386_v55 }
 0x11a   :  { %661 = vmatprep.subr.mxu1 %v817_v0 }
 0x11b   :  { %662 = vmatpush3.msra.mxu1 %v385_v56 }
 0x11c   :  { %663 = vmatprep.subr.mxu1 %v817_v0 }
 0x11d   :  { %664 = vmatpush3.msra.mxu1 %v384_v57 }
 0x11e   :  { %665 = vmatprep.subr.mxu1 %v817_v0 }
 0x11f   :  { %666 = vmatpush3.msra.mxu1 %v383_v58 }
 0x120   :  { %667 = vmatprep.subr.mxu1 %v817_v0 }
 0x121   :  { %668 = vmatpush3.msra.mxu1 %v382_v59 }
 0x122   :  { %669 = vmatprep.subr.mxu1 %v817_v0 }
 0x123   :  { %670 = vmatpush3.msra.mxu1 %v381_v60 }
 0x124   :  { %671 = vmatprep.subr.mxu1 %v817_v0 }
 0x125   :  { %672 = vmatpush3.msra.mxu1 %v380_v61 }
 0x126   :  { %673 = vmatprep.subr.mxu1 %v817_v0 }
 0x127   :  { %674 = vmatpush3.msra.mxu1 %v379_v62 }
 0x128   :  { %675 = vmatprep.subr.mxu1 %v817_v0 }
 0x129   :  { %676 = vmatpush3.msra.mxu1 %v378_v63 }
 0x12a   :  { %677 = vmatprep.subr.mxu1 %v817_v0 }
 0x12b   :  { %678 = vmatpush3.msra.mxu1 %v377_v1 }
 0x12c   :  { %679 = vmatprep.subr.mxu1 %v817_v0 }
 0x12d   :  { %680 = vmatpush3.msra.mxu1 %v376_v2 }
 0x12e   :  { %681 = vmatprep.subr.mxu1 %v817_v0 }
 0x12f   :  { %682 = vmatpush3.msra.mxu1 %v375_v3 }
 0x130   :  { %683 = vmatprep.subr.mxu1 %v817_v0 }
 0x131   :  { %684 = vmatpush3.msra.mxu1 %v374_v4 }
 0x132   :  { %685 = vmatprep.subr.mxu1 %v817_v0 }
 0x133   :  { %686 = vmatpush3.msra.mxu1 %v373_v10 }
 0x134   :  { %687 = vmatprep.subr.mxu1 %v817_v0 }
 0x135   :  { %688 = vmatpush3.msra.mxu1 %v372_v11 }
 0x136   :  { %689 = vmatprep.subr.mxu1 %v817_v0 }
 0x137   :  { %690 = vmatpush3.msra.mxu1 %v371_v12 }
 0x1d8   :  { %v272_v6 = vpop.f32.mrf.mxu1 }
 0x1d9   :  { %v273_v7 = vadd.f32 %v483_v5, %v272_v6 }
 0x1da   :  { %v623_v8 = vpop.f32.mrf.mxu1 }
 0x1db   :  { %v276_v9 = vmax.f32 %v273_v7, 0.0 }
 0x1dd   :  { %657 = vmatmul.mubr.f32.vlgmr.msra.gmra.mxu0 %v276_v9 }
 0x29d   :  { %v366_v14 = vpop.f32.mrf.mxu0 }
 0x29e   :  { %v367_v15 = vadd.f32 %v484_v13, %v366_v14 }
 0x29f   :  { %v658_v16 = vpop.f32.mrf.mxu0 }
 0x2a0   :  { %v370_v17 = vmax.f32 %v367_v15, 0.0 }
 0x2a2   :  { %692 = vmatmul.mubr.f32.vlgmr.msra.gmra.mxu1 %v370_v17 }
 0x362   :  { %v460_v19 = vpop.f32.mrf.mxu1 }
 0x363   :  { %v461_v20 = vadd.f32 %v485_v18, %v460_v19 }
 0x364   :  { %v693_v0 = vpop.f32.mrf.mxu1 }
 0x365   :  { %464 = vst [vmem:[#allocation10] sm:$0xff] %v461_v20 }
 0x366   :  { %794 = shalt.err (!%p791_p10)
}
 0x367   :  { %474 = dma.vmem_to_hbm [thread:$0]  %s472_s14, 128, %s993_s9, [#allocation4]  }
 0x368   :  { %809 = dma.done.wait [#allocation4], 128  }
 0x369   :  { %810 = vsyncadd [#allocation4], 4294967168 }
 0x36a   :  { %478 = vsyncpa [#allocation3], 1 }
 0x36b   :  { %479 = vsyncpa [#allocation6], 1 }
 0x36c   :  { %480 = vsyncpa [#allocation9], 1 }
 0x36d   :  { %481 = vsyncpa [#allocation4], 1 }

</bundles_post_ra>
